<compile_context>
chip_gen: v5e
topology: v5e:2x2
jax: 0.10.0
libtpu: 0.0.40
codegen_flags: <defaults>
</compile_context>

<pallas_src>
import numpy as np
import jax
import jax.numpy as jnp
from jax.experimental import pallas as pl
from jax.experimental.pallas import tpu as pltpu

# ---- problem sizes (small, consistent with the module: input_dim_1 == input_dim_2 == hidden_dim) ----
B, N, D = 2, 8, 32          # batch, seq-len, input_dim == hidden_dim
H, P = 4, 8                 # num_heads, head_dim (H * P == D)
MLP_HIDDEN = 64             # BasicMLP hidden width
EPS = 1e-5                  # nn.LayerNorm default eps
FACTOR = 1.0 / (P ** 0.5)
BN = B * N
LANES = 128

# ---- f32 parameter slab layout (rows x 128 lanes) ----
RP_PROJ = 0                 # rows  0:32  -> [W_k1 | W_v1 | W_q2*factor | 0]
RP_BIAS = 32                # row  32     -> [0 | b_v1 | b_q2*factor | 0]
RP_B1 = 33                  # row  33     -> [f1_b1 | f2_b1]
RP_B2 = 34                  # row  34     -> [f1_b2 | f2_b2 | 0]
RP_LNG = 35                 # row  35     -> [ln1_g h1 | ln2_g h1 | ln1_g h2 | ln2_g h2]
RP_LNB = 36                 # row  36     -> same layout, betas
RP_HEADMASK = 40            # rows 40:44  -> head lane masks: row h = 1 where lane//P == h
RP_BATCHMASK = 48           # rows 48:64  -> batch block-diag mask (BN x BN): 0 / -1e30
P_ROWS = 64

# ---- bf16 weight slab layout (rows x 128 lanes) ----
RW_W1 = 0                   # rows   0:64  -> block-diag W1   (2D, 128)
RW_W2 = 64                  # rows  64:192 -> block-diag W2   (2*MLP_HIDDEN, 2D) in lanes 0:64
W_ROWS = 192


# ----------------------------- kernel helpers (traced inside the kernel) -----------------------------
def _layernorm(x, gamma, beta):
    mu = jnp.mean(x, axis=-1, keepdims=True)
    var = jnp.mean((x - mu) ** 2, axis=-1, keepdims=True)
    return (x - mu) * jax.lax.rsqrt(var + EPS) * gamma + beta


# ----------------------------------------- Pallas kernel ---------------------------------------------
def cross_attn_block_kernel(x12_ref, w_ref, p_ref, out_ref):
    x1 = x12_ref[0:BN, :]                                   # (BN, D) f32
    x2 = x12_ref[BN:2 * BN, :]                              # (BN, D) f32

    # ---- projections (f32; factor pre-folded into W_q2 / b_q2; b_k1 dropped -- softmax invariant) ----
    k1 = jnp.dot(x1, p_ref[RP_PROJ:RP_PROJ + D, 0:D],
                 preferred_element_type=jnp.float32)                                          # (BN, D)
    v1 = jnp.dot(x1, p_ref[RP_PROJ:RP_PROJ + D, D:2 * D],
                 preferred_element_type=jnp.float32) + p_ref[RP_BIAS:RP_BIAS + 1, D:2 * D]    # (BN, D)
    q2 = jnp.dot(x2, p_ref[RP_PROJ:RP_PROJ + D, 2 * D:3 * D],
                 preferred_element_type=jnp.float32) + p_ref[RP_BIAS:RP_BIAS + 1, 2 * D:3 * D]  # (BN, D)

    # ---- head-stacked cross attention: exactly two MXU matmuls ----
    hm = [p_ref[RP_HEADMASK + h:RP_HEADMASK + h + 1, 0:D] for h in range(H)]   # 4 x (1, D) lane masks
    q2_stack = jnp.concatenate([q2 * hm[0], q2 * hm[1], q2 * hm[2], q2 * hm[3]], axis=0)   # (H*BN, D)

    # scores[h*BN + i, j] = sum_{d in head h} q2[i,d] * k1[j,d]   (NT contraction on the MXU)
    scores = jax.lax.dot_general(q2_stack, k1, (((1,), (1,)), ((), ())),
                                 preferred_element_type=jnp.float32)                        # (H*BN, BN)
    bm = p_ref[RP_BATCHMASK:RP_BATCHMASK + BN, 0:BN]                                        # (BN, BN)
    scores = scores + jnp.concatenate([bm, bm, bm, bm], axis=0)

    # one ordinary row-softmax (per (head, query) row over the BN keys)
    m = jnp.max(scores, axis=-1, keepdims=True)
    e = jnp.exp(scores - m)
    probs = e * pl.reciprocal(jnp.sum(e, axis=-1, keepdims=True), approx=True)

    pv = jnp.dot(probs, v1, preferred_element_type=jnp.float32)                             # (H*BN, D)
    out1 = (pv[0:BN] * hm[0] + pv[BN:2 * BN] * hm[1]
            + pv[2 * BN:3 * BN] * hm[2] + pv[3 * BN:4 * BN] * hm[3])                        # (BN, D)

    # NOTE: as in the PyTorch source, the second attention branch (q1/k2/v2 -> out2) never reaches
    # the output (both FFN heads consume out1), so it is omitted on purpose.

    # ---- both FFN heads, fused via block-diagonal MLP weights (bf16 weights, f32 accumulate) ----
    g11 = p_ref[RP_LNG:RP_LNG + 1, 0:D];          b11 = p_ref[RP_LNB:RP_LNB + 1, 0:D]
    g12 = p_ref[RP_LNG:RP_LNG + 1, D:2 * D];      b12 = p_ref[RP_LNB:RP_LNB + 1, D:2 * D]
    g21 = p_ref[RP_LNG:RP_LNG + 1, 2 * D:3 * D];  b21 = p_ref[RP_LNB:RP_LNB + 1, 2 * D:3 * D]
    g22 = p_ref[RP_LNG:RP_LNG + 1, 3 * D:4 * D];  b22 = p_ref[RP_LNB:RP_LNB + 1, 3 * D:4 * D]

    s1_1 = _layernorm(x1, g11, b11) + out1
    s1_2 = _layernorm(x2, g21, b21) + out1
    z_cat = jnp.concatenate([_layernorm(s1_1, g12, b12),
                             _layernorm(s1_2, g22, b22)], axis=-1)                          # (BN, 2D)

    w1_blk = w_ref[RW_W1:RW_W1 + 2 * D, :]                                                  # (2D, 128) bf16
    w2_blk = w_ref[RW_W2:RW_W2 + 2 * MLP_HIDDEN, 0:2 * D]                                   # (128, 2D) bf16
    b1_cat = p_ref[RP_B1:RP_B1 + 1, :]                                                      # (1, 128) f32
    b2_cat = p_ref[RP_B2:RP_B2 + 1, 0:2 * D]                                                # (1, 2D)  f32

    hid = jnp.maximum(jnp.dot(z_cat.astype(jnp.bfloat16), w1_blk,
                              preferred_element_type=jnp.float32) + b1_cat, 0.0)            # (BN, 128)
    mlp_cat = jnp.dot(hid.astype(jnp.bfloat16), w2_blk,
                      preferred_element_type=jnp.float32) + b2_cat                          # (BN, 2D)

    # The fused output IS torch.cat((z1, z2), dim=2) for the flattened (B*N) rows.
    out_ref[...] = jnp.concatenate([s1_1, s1_2], axis=-1) + mlp_cat


# ------------------------------------------- wrapper --------------------------------------------------
@jax.jit
def cross_attention_block(x1, x2, wslab, pslab):
    # stack the two inputs along sublanes -> a single input DMA (do NOT concatenate along lanes)
    x12 = jnp.concatenate([x1.reshape(BN, D), x2.reshape(BN, D)], axis=0)
    vmem = pl.BlockSpec(memory_space=pltpu.MemorySpace.VMEM)
    out_flat = pl.pallas_call(
        cross_attn_block_kernel,
        out_shape=jax.ShapeDtypeStruct((BN, 2 * D), jnp.float32),
        in_specs=[vmem, vmem, vmem],
        out_specs=vmem,
    )(x12, wslab, pslab)
    return out_flat.reshape(B, N, 2 * D)


# ------------------------------------- host-side weight packing ---------------------------------------
def pack_params(p):
    f32 = jnp.float32

    # ---- f32 slab: projection weights, biases, LN params, compile-time masks ----
    ps = jnp.zeros((P_ROWS, LANES), f32)
    ps = ps.at[RP_PROJ:RP_PROJ + D, 0:D].set(p["qkv1_w"][1])                    # W_k1 (bias dropped)
    ps = ps.at[RP_PROJ:RP_PROJ + D, D:2 * D].set(p["qkv1_w"][2])                # W_v1
    ps = ps.at[RP_PROJ:RP_PROJ + D, 2 * D:3 * D].set(p["qkv2_w"][0] * FACTOR)   # W_q2 * factor
    ps = ps.at[RP_BIAS, D:2 * D].set(p["qkv1_b"][2])                            # b_v1
    ps = ps.at[RP_BIAS, 2 * D:3 * D].set(p["qkv2_b"][0] * FACTOR)               # b_q2 * factor
    ps = ps.at[RP_B1, 0:MLP_HIDDEN].set(p["f1_b1"][0])
    ps = ps.at[RP_B1, MLP_HIDDEN:2 * MLP_HIDDEN].set(p["f2_b1"][0])
    ps = ps.at[RP_B2, 0:D].set(p["f1_b2"][0])
    ps = ps.at[RP_B2, D:2 * D].set(p["f2_b2"][0])
    ps = ps.at[RP_LNG, 0:D].set(p["f1_ln_w"][0])
    ps = ps.at[RP_LNG, D:2 * D].set(p["f1_ln_w"][1])
    ps = ps.at[RP_LNG, 2 * D:3 * D].set(p["f2_ln_w"][0])
    ps = ps.at[RP_LNG, 3 * D:4 * D].set(p["f2_ln_w"][1])
    ps = ps.at[RP_LNB, 0:D].set(p["f1_ln_b"][0])
    ps = ps.at[RP_LNB, D:2 * D].set(p["f1_ln_b"][1])
    ps = ps.at[RP_LNB, 2 * D:3 * D].set(p["f2_ln_b"][0])
    ps = ps.at[RP_LNB, 3 * D:4 * D].set(p["f2_ln_b"][1])

    # compile-time masks, precomputed host-side (no in-kernel iota/div/compare)
    d_idx = np.arange(D)
    head_mask = (d_idx[None, :] // P == np.arange(H)[:, None]).astype(np.float32)   # (H, D)
    row = np.arange(BN)
    batch_mask = np.where((row[:, None] // N) == (row[None, :] // N),
                          0.0, -1e30).astype(np.float32)                            # (BN, BN)
    ps = ps.at[RP_HEADMASK:RP_HEADMASK + H, 0:D].set(jnp.asarray(head_mask))
    ps = ps.at[RP_BATCHMASK:RP_BATCHMASK + BN, 0:BN].set(jnp.asarray(batch_mask))

    # ---- bf16 slab: the two big block-diagonal FFN weight blocks ----
    ws = jnp.zeros((W_ROWS, LANES), f32)
    ws = ws.at[RW_W1:RW_W1 + D, 0:MLP_HIDDEN].set(p["f1_w1"])
    ws = ws.at[RW_W1 + D:RW_W1 + 2 * D, MLP_HIDDEN:2 * MLP_HIDDEN].set(p["f2_w1"])
    ws = ws.at[RW_W2:RW_W2 + MLP_HIDDEN, 0:D].set(p["f1_w2"])
    ws = ws.at[RW_W2 + MLP_HIDDEN:RW_W2 + 2 * MLP_HIDDEN, D:2 * D].set(p["f2_w2"])
    return ws.astype(jnp.bfloat16), ps


# ------------------------------------ pure-JAX reference (sanity) ------------------------------------
def reference(x1, x2, p):
    def proj(x, w, b, i):
        return x @ w[i] + b[i]

    def ln(x, g, b):
        mu = x.mean(-1, keepdims=True)
        var = ((x - mu) ** 2).mean(-1, keepdims=True)
        return (x - mu) / jnp.sqrt(var + EPS) * g + b

    def ffn(x, z1, lw, lb, w1, b1, w2, b2):
        s1 = ln(x, lw[0], lb[0]) + z1
        z2 = ln(s1, lw[1], lb[1])
        return s1 + (jnp.maximum(z2 @ w1 + b1[0], 0.0) @ w2 + b2[0])

    k1 = proj(x1, p["qkv1_w"], p["qkv1_b"], 1).reshape(B, N, H, P)
    v1 = proj(x1, p["qkv1_w"], p["qkv1_b"], 2).reshape(B, N, H, P)
    q2 = proj(x2, p["qkv2_w"], p["qkv2_b"], 0).reshape(B, N, H, P)
    s = jnp.einsum("bihp,bjhp->bhij", q2, k1) * FACTOR
    s = jax.nn.softmax(s, axis=-1)
    out1 = jnp.einsum("bhij,bjhp->bihp", s, v1).reshape(B, N, D)
    z1 = ffn(x1, out1, p["f1_ln_w"], p["f1_ln_b"], p["f1_w1"], p["f1_b1"], p["f1_w2"], p["f1_b2"])
    z2 = ffn(x2, out1, p["f2_ln_w"], p["f2_ln_b"], p["f2_w1"], p["f2_b1"], p["f2_w2"], p["f2_b2"])
    return jnp.concatenate([z1, z2], axis=2)


# ------------------------------------------ parameters ------------------------------------------------
def make_params(key):
    ks = iter(jax.random.split(key, 16))

    def lin(fan_in, shape):
        return (jax.random.normal(next(ks), shape, jnp.float32) / jnp.sqrt(fan_in)).astype(jnp.float32)

    params = {
        # MSACrossAttention linear layers (q/k/v for each input), stacked along axis 0
        "qkv1_w": lin(D, (3, D, D)), "qkv1_b": 0.01 * jax.random.normal(next(ks), (3, D), jnp.float32),
        "qkv2_w": lin(D, (3, D, D)), "qkv2_b": 0.01 * jax.random.normal(next(ks), (3, D), jnp.float32),
        # FFN head1: two LayerNorms (PyTorch default init: ones / zeros) + 2-layer MLP
        "f1_ln_w": jnp.ones((2, D), jnp.float32), "f1_ln_b": jnp.zeros((2, D), jnp.float32),
        "f1_w1": lin(D, (D, MLP_HIDDEN)), "f1_b1": 0.01 * jax.random.normal(next(ks), (1, MLP_HIDDEN), jnp.float32),
        "f1_w2": lin(MLP_HIDDEN, (MLP_HIDDEN, D)), "f1_b2": 0.01 * jax.random.normal(next(ks), (1, D), jnp.float32),
        # FFN head2
        "f2_ln_w": jnp.ones((2, D), jnp.float32), "f2_ln_b": jnp.zeros((2, D), jnp.float32),
        "f2_w1": lin(D, (D, MLP_HIDDEN)), "f2_b1": 0.01 * jax.random.normal(next(ks), (1, MLP_HIDDEN), jnp.float32),
        "f2_w2": lin(MLP_HIDDEN, (MLP_HIDDEN, D)), "f2_b2": 0.01 * jax.random.normal(next(ks), (1, D), jnp.float32),
    }
    return params


if __name__ == "__main__":
    key = jax.random.PRNGKey(0)
    kx1, kx2, kp = jax.random.split(key, 3)
    x1 = jax.random.normal(kx1, (B, N, D), jnp.float32)
    x2 = jax.random.normal(kx2, (B, N, D), jnp.float32)
    params = make_params(kp)
    wslab, pslab = pack_params(params)

    out = jax.block_until_ready(cross_attention_block(x1, x2, wslab, pslab))
    ref = reference(x1, x2, params)

    assert out.shape == (B, N, 2 * D), out.shape
    # Tolerance covers the bf16 FFN weight blocks and the approximate EUP softmax reciprocal;
    # the projection / attention path is exact f32 (max abs error observed well under this bound).
    assert jnp.allclose(out, ref, atol=3e-2, rtol=2e-2), float(jnp.abs(out - ref).max())
    print("KERNEL_OK")
</pallas_src>

<mosaic_0001>
module attributes {stable_mosaic.version = 11 : i64} {
  func.func @cross_attn_block_kernel(%arg0: memref<32x32xf32, #tpu.memory_space<vmem>>, %arg1: memref<192x128xbf16, #tpu.memory_space<vmem>>, %arg2: memref<64x128xf32, #tpu.memory_space<vmem>>, %arg3: memref<16x64xf32, #tpu.memory_space<vmem>>) attributes {dimension_semantics = [], scalar_prefetch = 0 : i64, scratch_operands = 0 : i64, tpu.core_type = #tpu.core_type<tc>} {
    %c0 = arith.constant 0 : index
    %c0_0 = arith.constant 0 : index
    %0 = vector.load %arg0[%c0, %c0_0] : memref<32x32xf32, #tpu.memory_space<vmem>>, vector<16x32xf32>
    %c16 = arith.constant 16 : index
    %c0_1 = arith.constant 0 : index
    %1 = vector.load %arg0[%c16, %c0_1] : memref<32x32xf32, #tpu.memory_space<vmem>>, vector<16x32xf32>
    %c0_2 = arith.constant 0 : index
    %c0_3 = arith.constant 0 : index
    %2 = vector.load %arg2[%c0_2, %c0_3] : memref<64x128xf32, #tpu.memory_space<vmem>>, vector<32x32xf32>
    %cst = arith.constant dense<0.000000e+00> : vector<16x32xf32>
    %3 = tpu.matmul %0, %2, %cst {dimension_numbers = #tpu.dot_dimension_numbers<[1], [0], [0], [1], [0, 0, 1, 1], [], []>} : vector<16x32xf32>, vector<32x32xf32>, vector<16x32xf32> -> vector<16x32xf32>
    %c0_4 = arith.constant 0 : index
    %c32 = arith.constant 32 : index
    %4 = vector.load %arg2[%c0_4, %c32] : memref<64x128xf32, #tpu.memory_space<vmem>>, vector<32x32xf32>
    %cst_5 = arith.constant dense<0.000000e+00> : vector<16x32xf32>
    %5 = tpu.matmul %0, %4, %cst_5 {dimension_numbers = #tpu.dot_dimension_numbers<[1], [0], [0], [1], [0, 0, 1, 1], [], []>} : vector<16x32xf32>, vector<32x32xf32>, vector<16x32xf32> -> vector<16x32xf32>
    %c32_6 = arith.constant 32 : index
    %c32_7 = arith.constant 32 : index
    %6 = vector.load %arg2[%c32_6, %c32_7] : memref<64x128xf32, #tpu.memory_space<vmem>>, vector<1x32xf32>
    %7 = vector.broadcast %6 : vector<1x32xf32> to vector<16x32xf32>
    %8 = arith.addf %5, %7 : vector<16x32xf32>
    %c0_8 = arith.constant 0 : index
    %c64 = arith.constant 64 : index
    %9 = vector.load %arg2[%c0_8, %c64] : memref<64x128xf32, #tpu.memory_space<vmem>>, vector<32x32xf32>
    %cst_9 = arith.constant dense<0.000000e+00> : vector<16x32xf32>
    %10 = tpu.matmul %1, %9, %cst_9 {dimension_numbers = #tpu.dot_dimension_numbers<[1], [0], [0], [1], [0, 0, 1, 1], [], []>} : vector<16x32xf32>, vector<32x32xf32>, vector<16x32xf32> -> vector<16x32xf32>
    %c32_10 = arith.constant 32 : index
    %c64_11 = arith.constant 64 : index
    %11 = vector.load %arg2[%c32_10, %c64_11] : memref<64x128xf32, #tpu.memory_space<vmem>>, vector<1x32xf32>
    %12 = vector.broadcast %11 : vector<1x32xf32> to vector<16x32xf32>
    %13 = arith.addf %10, %12 : vector<16x32xf32>
    %c40 = arith.constant 40 : index
    %c0_12 = arith.constant 0 : index
    %14 = vector.load %arg2[%c40, %c0_12] : memref<64x128xf32, #tpu.memory_space<vmem>>, vector<1x32xf32>
    %c41 = arith.constant 41 : index
    %c0_13 = arith.constant 0 : index
    %15 = vector.load %arg2[%c41, %c0_13] : memref<64x128xf32, #tpu.memory_space<vmem>>, vector<1x32xf32>
    %c42 = arith.constant 42 : index
    %c0_14 = arith.constant 0 : index
    %16 = vector.load %arg2[%c42, %c0_14] : memref<64x128xf32, #tpu.memory_space<vmem>>, vector<1x32xf32>
    %c43 = arith.constant 43 : index
    %c0_15 = arith.constant 0 : index
    %17 = vector.load %arg2[%c43, %c0_15] : memref<64x128xf32, #tpu.memory_space<vmem>>, vector<1x32xf32>
    %18 = vector.broadcast %14 : vector<1x32xf32> to vector<16x32xf32>
    %19 = arith.mulf %13, %18 : vector<16x32xf32>
    %20 = vector.broadcast %15 : vector<1x32xf32> to vector<16x32xf32>
    %21 = arith.mulf %13, %20 : vector<16x32xf32>
    %22 = vector.broadcast %16 : vector<1x32xf32> to vector<16x32xf32>
    %23 = arith.mulf %13, %22 : vector<16x32xf32>
    %24 = vector.broadcast %17 : vector<1x32xf32> to vector<16x32xf32>
    %25 = arith.mulf %13, %24 : vector<16x32xf32>
    %26 = tpu.concatenate %19, %21, %23, %25 in 0 : vector<16x32xf32>, vector<16x32xf32>, vector<16x32xf32>, vector<16x32xf32> -> vector<64x32xf32>
    %cst_16 = arith.constant dense<0.000000e+00> : vector<64x16xf32>
    %27 = tpu.matmul %26, %3, %cst_16 {dimension_numbers = #tpu.dot_dimension_numbers<[1], [1], [0], [0], [0, 0, 1, 0], [], []>} : vector<64x32xf32>, vector<16x32xf32>, vector<64x16xf32> -> vector<64x16xf32>
    %c48 = arith.constant 48 : index
    %c0_17 = arith.constant 0 : index
    %28 = vector.load %arg2[%c48, %c0_17] : memref<64x128xf32, #tpu.memory_space<vmem>>, vector<16x16xf32>
    %29 = tpu.concatenate %28, %28, %28, %28 in 0 : vector<16x16xf32>, vector<16x16xf32>, vector<16x16xf32>, vector<16x16xf32> -> vector<64x16xf32>
    %30 = arith.addf %27, %29 : vector<64x16xf32>
    %cst_18 = arith.constant dense<0xFF800000> : vector<64xf32>
    %31 = vector.multi_reduction <maximumf>, %30, %cst_18 [1] : vector<64x16xf32> to vector<64xf32>
    %32 = vector.shape_cast %31 : vector<64xf32> to vector<64x1xf32>
    %33 = vector.broadcast %32 : vector<64x1xf32> to vector<64x16xf32>
    %34 = arith.subf %30, %33 : vector<64x16xf32>
    %35 = math.exp %34 : vector<64x16xf32>
    %cst_19 = arith.constant dense<0.000000e+00> : vector<64xf32>
    %36 = vector.multi_reduction <add>, %35, %cst_19 [1] : vector<64x16xf32> to vector<64xf32>
    %37 = vector.shape_cast %36 : vector<64xf32> to vector<64x1xf32>
    %38 = tpu.reciprocal %37 {approx = true} : vector<64x1xf32> -> vector<64x1xf32>
    %39 = vector.broadcast %38 : vector<64x1xf32> to vector<64x16xf32>
    %40 = arith.mulf %35, %39 : vector<64x16xf32>
    %cst_20 = arith.constant dense<0.000000e+00> : vector<64x32xf32>
    %41 = tpu.matmul %40, %8, %cst_20 {dimension_numbers = #tpu.dot_dimension_numbers<[1], [0], [0], [1], [0, 0, 1, 1], [], []>} : vector<64x16xf32>, vector<16x32xf32>, vector<64x32xf32> -> vector<64x32xf32>
    %42 = vector.extract_strided_slice %41 {offsets = [0, 0], sizes = [16, 32], strides = [1, 1]} : vector<64x32xf32> to vector<16x32xf32>
    %43 = vector.broadcast %14 : vector<1x32xf32> to vector<16x32xf32>
    %44 = arith.mulf %42, %43 : vector<16x32xf32>
    %45 = vector.extract_strided_slice %41 {offsets = [16, 0], sizes = [16, 32], strides = [1, 1]} : vector<64x32xf32> to vector<16x32xf32>
    %46 = vector.broadcast %15 : vector<1x32xf32> to vector<16x32xf32>
    %47 = arith.mulf %45, %46 : vector<16x32xf32>
    %48 = arith.addf %44, %47 : vector<16x32xf32>
    %49 = vector.extract_strided_slice %41 {offsets = [32, 0], sizes = [16, 32], strides = [1, 1]} : vector<64x32xf32> to vector<16x32xf32>
    %50 = vector.broadcast %16 : vector<1x32xf32> to vector<16x32xf32>
    %51 = arith.mulf %49, %50 : vector<16x32xf32>
    %52 = arith.addf %48, %51 : vector<16x32xf32>
    %53 = vector.extract_strided_slice %41 {offsets = [48, 0], sizes = [16, 32], strides = [1, 1]} : vector<64x32xf32> to vector<16x32xf32>
    %54 = vector.broadcast %17 : vector<1x32xf32> to vector<16x32xf32>
    %55 = arith.mulf %53, %54 : vector<16x32xf32>
    %56 = arith.addf %52, %55 : vector<16x32xf32>
    %c35 = arith.constant 35 : index
    %c0_21 = arith.constant 0 : index
    %57 = vector.load %arg2[%c35, %c0_21] : memref<64x128xf32, #tpu.memory_space<vmem>>, vector<1x32xf32>
    %c36 = arith.constant 36 : index
    %c0_22 = arith.constant 0 : index
    %58 = vector.load %arg2[%c36, %c0_22] : memref<64x128xf32, #tpu.memory_space<vmem>>, vector<1x32xf32>
    %c35_23 = arith.constant 35 : index
    %c32_24 = arith.constant 32 : index
    %59 = vector.load %arg2[%c35_23, %c32_24] : memref<64x128xf32, #tpu.memory_space<vmem>>, vector<1x32xf32>
    %c36_25 = arith.constant 36 : index
    %c32_26 = arith.constant 32 : index
    %60 = vector.load %arg2[%c36_25, %c32_26] : memref<64x128xf32, #tpu.memory_space<vmem>>, vector<1x32xf32>
    %c35_27 = arith.constant 35 : index
    %c64_28 = arith.constant 64 : index
    %61 = vector.load %arg2[%c35_27, %c64_28] : memref<64x128xf32, #tpu.memory_space<vmem>>, vector<1x32xf32>
    %c36_29 = arith.constant 36 : index
    %c64_30 = arith.constant 64 : index
    %62 = vector.load %arg2[%c36_29, %c64_30] : memref<64x128xf32, #tpu.memory_space<vmem>>, vector<1x32xf32>
    %c35_31 = arith.constant 35 : index
    %c96 = arith.constant 96 : index
    %63 = vector.load %arg2[%c35_31, %c96] : memref<64x128xf32, #tpu.memory_space<vmem>>, vector<1x32xf32>
    %c36_32 = arith.constant 36 : index
    %c96_33 = arith.constant 96 : index
    %64 = vector.load %arg2[%c36_32, %c96_33] : memref<64x128xf32, #tpu.memory_space<vmem>>, vector<1x32xf32>
    %cst_34 = arith.constant dense<0.000000e+00> : vector<16xf32>
    %65 = vector.multi_reduction <add>, %0, %cst_34 [1] : vector<16x32xf32> to vector<16xf32>
    %66 = vector.shape_cast %65 : vector<16xf32> to vector<16x1xf32>
    %cst_35 = arith.constant 3.200000e+01 : f32
    %67 = vector.broadcast %cst_35 : f32 to vector<16x1xf32>
    %68 = arith.divf %66, %67 : vector<16x1xf32>
    %69 = vector.broadcast %68 : vector<16x1xf32> to vector<16x32xf32>
    %70 = arith.subf %0, %69 : vector<16x32xf32>
    %71 = arith.mulf %70, %70 : vector<16x32xf32>
    %cst_36 = arith.constant dense<0.000000e+00> : vector<16xf32>
    %72 = vector.multi_reduction <add>, %71, %cst_36 [1] : vector<16x32xf32> to vector<16xf32>
    %73 = vector.shape_cast %72 : vector<16xf32> to vector<16x1xf32>
    %cst_37 = arith.constant 3.200000e+01 : f32
    %74 = vector.broadcast %cst_37 : f32 to vector<16x1xf32>
    %75 = arith.divf %73, %74 : vector<16x1xf32>
    %76 = vector.broadcast %68 : vector<16x1xf32> to vector<16x32xf32>
    %77 = arith.subf %0, %76 : vector<16x32xf32>
    %cst_38 = arith.constant 9.99999974E-6 : f32
    %78 = vector.broadcast %cst_38 : f32 to vector<16x1xf32>
    %79 = arith.addf %75, %78 : vector<16x1xf32>
    %80 = math.rsqrt %79 : vector<16x1xf32>
    %81 = vector.broadcast %80 : vector<16x1xf32> to vector<16x32xf32>
    %82 = arith.mulf %77, %81 : vector<16x32xf32>
    %83 = vector.broadcast %57 : vector<1x32xf32> to vector<16x32xf32>
    %84 = arith.mulf %82, %83 : vector<16x32xf32>
    %85 = vector.broadcast %58 : vector<1x32xf32> to vector<16x32xf32>
    %86 = arith.addf %84, %85 : vector<16x32xf32>
    %87 = arith.addf %86, %56 : vector<16x32xf32>
    %cst_39 = arith.constant dense<0.000000e+00> : vector<16xf32>
    %88 = vector.multi_reduction <add>, %1, %cst_39 [1] : vector<16x32xf32> to vector<16xf32>
    %89 = vector.shape_cast %88 : vector<16xf32> to vector<16x1xf32>
    %cst_40 = arith.constant 3.200000e+01 : f32
    %90 = vector.broadcast %cst_40 : f32 to vector<16x1xf32>
    %91 = arith.divf %89, %90 : vector<16x1xf32>
    %92 = vector.broadcast %91 : vector<16x1xf32> to vector<16x32xf32>
    %93 = arith.subf %1, %92 : vector<16x32xf32>
    %94 = arith.mulf %93, %93 : vector<16x32xf32>
    %cst_41 = arith.constant dense<0.000000e+00> : vector<16xf32>
    %95 = vector.multi_reduction <add>, %94, %cst_41 [1] : vector<16x32xf32> to vector<16xf32>
    %96 = vector.shape_cast %95 : vector<16xf32> to vector<16x1xf32>
    %cst_42 = arith.constant 3.200000e+01 : f32
    %97 = vector.broadcast %cst_42 : f32 to vector<16x1xf32>
    %98 = arith.divf %96, %97 : vector<16x1xf32>
    %99 = vector.broadcast %91 : vector<16x1xf32> to vector<16x32xf32>
    %100 = arith.subf %1, %99 : vector<16x32xf32>
    %cst_43 = arith.constant 9.99999974E-6 : f32
    %101 = vector.broadcast %cst_43 : f32 to vector<16x1xf32>
    %102 = arith.addf %98, %101 : vector<16x1xf32>
    %103 = math.rsqrt %102 : vector<16x1xf32>
    %104 = vector.broadcast %103 : vector<16x1xf32> to vector<16x32xf32>
    %105 = arith.mulf %100, %104 : vector<16x32xf32>
    %106 = vector.broadcast %61 : vector<1x32xf32> to vector<16x32xf32>
    %107 = arith.mulf %105, %106 : vector<16x32xf32>
    %108 = vector.broadcast %62 : vector<1x32xf32> to vector<16x32xf32>
    %109 = arith.addf %107, %108 : vector<16x32xf32>
    %110 = arith.addf %109, %56 : vector<16x32xf32>
    %cst_44 = arith.constant dense<0.000000e+00> : vector<16xf32>
    %111 = vector.multi_reduction <add>, %87, %cst_44 [1] : vector<16x32xf32> to vector<16xf32>
    %112 = vector.shape_cast %111 : vector<16xf32> to vector<16x1xf32>
    %cst_45 = arith.constant 3.200000e+01 : f32
    %113 = vector.broadcast %cst_45 : f32 to vector<16x1xf32>
    %114 = arith.divf %112, %113 : vector<16x1xf32>
    %115 = vector.broadcast %114 : vector<16x1xf32> to vector<16x32xf32>
    %116 = arith.subf %87, %115 : vector<16x32xf32>
    %117 = arith.mulf %116, %116 : vector<16x32xf32>
    %cst_46 = arith.constant dense<0.000000e+00> : vector<16xf32>
    %118 = vector.multi_reduction <add>, %117, %cst_46 [1] : vector<16x32xf32> to vector<16xf32>
    %119 = vector.shape_cast %118 : vector<16xf32> to vector<16x1xf32>
    %cst_47 = arith.constant 3.200000e+01 : f32
    %120 = vector.broadcast %cst_47 : f32 to vector<16x1xf32>
    %121 = arith.divf %119, %120 : vector<16x1xf32>
    %122 = vector.broadcast %114 : vector<16x1xf32> to vector<16x32xf32>
    %123 = arith.subf %87, %122 : vector<16x32xf32>
    %cst_48 = arith.constant 9.99999974E-6 : f32
    %124 = vector.broadcast %cst_48 : f32 to vector<16x1xf32>
    %125 = arith.addf %121, %124 : vector<16x1xf32>
    %126 = math.rsqrt %125 : vector<16x1xf32>
    %127 = vector.broadcast %126 : vector<16x1xf32> to vector<16x32xf32>
    %128 = arith.mulf %123, %127 : vector<16x32xf32>
    %129 = vector.broadcast %59 : vector<1x32xf32> to vector<16x32xf32>
    %130 = arith.mulf %128, %129 : vector<16x32xf32>
    %131 = vector.broadcast %60 : vector<1x32xf32> to vector<16x32xf32>
    %132 = arith.addf %130, %131 : vector<16x32xf32>
    %cst_49 = arith.constant dense<0.000000e+00> : vector<16xf32>
    %133 = vector.multi_reduction <add>, %110, %cst_49 [1] : vector<16x32xf32> to vector<16xf32>
    %134 = vector.shape_cast %133 : vector<16xf32> to vector<16x1xf32>
    %cst_50 = arith.constant 3.200000e+01 : f32
    %135 = vector.broadcast %cst_50 : f32 to vector<16x1xf32>
    %136 = arith.divf %134, %135 : vector<16x1xf32>
    %137 = vector.broadcast %136 : vector<16x1xf32> to vector<16x32xf32>
    %138 = arith.subf %110, %137 : vector<16x32xf32>
    %139 = arith.mulf %138, %138 : vector<16x32xf32>
    %cst_51 = arith.constant dense<0.000000e+00> : vector<16xf32>
    %140 = vector.multi_reduction <add>, %139, %cst_51 [1] : vector<16x32xf32> to vector<16xf32>
    %141 = vector.shape_cast %140 : vector<16xf32> to vector<16x1xf32>
    %cst_52 = arith.constant 3.200000e+01 : f32
    %142 = vector.broadcast %cst_52 : f32 to vector<16x1xf32>
    %143 = arith.divf %141, %142 : vector<16x1xf32>
    %144 = vector.broadcast %136 : vector<16x1xf32> to vector<16x32xf32>
    %145 = arith.subf %110, %144 : vector<16x32xf32>
    %cst_53 = arith.constant 9.99999974E-6 : f32
    %146 = vector.broadcast %cst_53 : f32 to vector<16x1xf32>
    %147 = arith.addf %143, %146 : vector<16x1xf32>
    %148 = math.rsqrt %147 : vector<16x1xf32>
    %149 = vector.broadcast %148 : vector<16x1xf32> to vector<16x32xf32>
    %150 = arith.mulf %145, %149 : vector<16x32xf32>
    %151 = vector.broadcast %63 : vector<1x32xf32> to vector<16x32xf32>
    %152 = arith.mulf %150, %151 : vector<16x32xf32>
    %153 = vector.broadcast %64 : vector<1x32xf32> to vector<16x32xf32>
    %154 = arith.addf %152, %153 : vector<16x32xf32>
    %155 = tpu.concatenate %132, %154 in 1 : vector<16x32xf32>, vector<16x32xf32> -> vector<16x64xf32>
    %c0_54 = arith.constant 0 : index
    %c0_55 = arith.constant 0 : index
    %156 = vector.load %arg1[%c0_54, %c0_55] : memref<192x128xbf16, #tpu.memory_space<vmem>>, vector<64x128xbf16>
    %c64_56 = arith.constant 64 : index
    %c0_57 = arith.constant 0 : index
    %157 = vector.load %arg1[%c64_56, %c0_57] : memref<192x128xbf16, #tpu.memory_space<vmem>>, vector<128x64xbf16>
    %c33 = arith.constant 33 : index
    %c0_58 = arith.constant 0 : index
    %158 = vector.load %arg2[%c33, %c0_58] : memref<64x128xf32, #tpu.memory_space<vmem>>, vector<1x128xf32>
    %c34 = arith.constant 34 : index
    %c0_59 = arith.constant 0 : index
    %159 = vector.load %arg2[%c34, %c0_59] : memref<64x128xf32, #tpu.memory_space<vmem>>, vector<1x64xf32>
    %160 = arith.truncf %155 : vector<16x64xf32> to vector<16x64xbf16>
    %cst_60 = arith.constant dense<0.000000e+00> : vector<16x128xf32>
    %161 = tpu.matmul %160, %156, %cst_60 {dimension_numbers = #tpu.dot_dimension_numbers<[1], [0], [0], [1], [0, 0, 1, 1], [], []>} : vector<16x64xbf16>, vector<64x128xbf16>, vector<16x128xf32> -> vector<16x128xf32>
    %162 = vector.broadcast %158 : vector<1x128xf32> to vector<16x128xf32>
    %163 = arith.addf %161, %162 : vector<16x128xf32>
    %cst_61 = arith.constant 0.000000e+00 : f32
    %164 = vector.broadcast %cst_61 : f32 to vector<16x128xf32>
    %165 = arith.maximumf %163, %164 : vector<16x128xf32>
    %166 = arith.truncf %165 : vector<16x128xf32> to vector<16x128xbf16>
    %cst_62 = arith.constant dense<0.000000e+00> : vector<16x64xf32>
    %167 = tpu.matmul %166, %157, %cst_62 {dimension_numbers = #tpu.dot_dimension_numbers<[1], [0], [0], [1], [0, 0, 1, 1], [], []>} : vector<16x128xbf16>, vector<128x64xbf16>, vector<16x64xf32> -> vector<16x64xf32>
    %168 = vector.broadcast %159 : vector<1x64xf32> to vector<16x64xf32>
    %169 = arith.addf %167, %168 : vector<16x64xf32>
    %170 = tpu.concatenate %87, %110 in 1 : vector<16x32xf32>, vector<16x32xf32> -> vector<16x64xf32>
    %171 = arith.addf %170, %169 : vector<16x64xf32>
    %c0_63 = arith.constant 0 : index
    %c0_64 = arith.constant 0 : index
    %172 = vector.load %arg3[%c0_63, %c0_64] : memref<16x64xf32, #tpu.memory_space<vmem>>, vector<16x64xf32>
    tpu.vector_store %arg3[%c0_63, %c0_64], %171 {strides = array<i32>} : memref<16x64xf32, #tpu.memory_space<vmem>>, vector<16x64xf32>,
    return
  }
}

</mosaic_0001>

<bundles_post_ra>
// kernel: cross_attention_block.1
= control target key start
LH: loop header
LB: loop body
LE: loop exit
PB: predicated region body
PF: predicated region fallthrough
CT: control target
= control target key end

     0   :  { %8 = vsyncpa [#allocation3], 0  ;;  %s1392_s0 = inlined_call_operand.vmem [shape: f32[32,32], index: 0, kind: input, shape index: {}]   ;;  %s1393_s1 = inlined_call_operand.hbm [shape: bf16[192,128], index: 1, kind: input, shape index: {}]   ;;  %s1394_s2 = inlined_call_operand.vmem [shape: f32[64,128], index: 2, kind: input, shape index: {}]   ;;  %s1395_s3 = inlined_call_operand.hbm [shape: f32[16,64], index: 3, kind: output, shape index: {}]  }
   0x1   :  { %9 = vsyncpa [#allocation4], 0  ;;  %s16_s14 = sshll.u32 %s1393_s1, 4  ;;  %s1054_s15 = smov [#allocation2]   ;;  %s17_s14 = int_to_ptr.hbm [resolvable:$true] %s16_s14 }
   0x2   :  { %s18_s16 = sshll.u32 %s1054_s15, 4  ;;  %s1055_s17 = smov 64   ;;  %s19_s16 = int_to_ptr.vmem [resolvable:$true] %s18_s16 }
   0x3   :  { %s1056_s18 = smov 4  }
   0x4   :  { %24 = dma.hbm_to_vmem [thread:$0]  %s17_s14, 1536, %s19_s16, [#allocation3], %s1055_s17, %s1055_s17, %s1056_s18  }
   0x5   :  { %1050 = dma.done.wait [#allocation3], 1536  }
   0x6   :  { %1051 = vsyncadd [#allocation3], 4294965760  ;;  %v38_v0 = vld [vmem:[%s1394_s2 + $0x10] sm:$0xff]  ;;  %v39_v1 = vld [vmem:[%s1394_s2 + $0x18] sm:$0xff]  ;;  %vm40_vm0 = vcmask 261120   ;;  %s1057_s14 = smov 96  }
   0x7   :  { %v918_v2 = vpack.i.bf16 %v38_v0, %v39_v1  ;;  %59 = vmatpush.msra.mxu0 %v39_v1  ;;  %v36_v3 = vld [vmem:[%s1394_s2] sm:$0xff]  ;;  %v37_v4 = vld [vmem:[%s1394_s2 + $0x8] sm:$0xff]  ;;  %v1126_v15 = vld [vmem:[%s1392_s0 + $0x10] sm:$0xff]  ;;  %vm248_vm1 = vcmask 130048   ;;  %s1060_s29 = smov [#allocation5]   ;;  %s809_s6 = sshll.u32 %s1395_s3, 4  ;;  %s810_s6 = int_to_ptr.hbm [resolvable:$true] %s809_s6 }
   0x8   :  { %v1104_v5 = vld [vmem:[%s1392_s0] sm:$0xff]  ;;  %v923_v6 = vpack.i.bf16 %v36_v3, %v37_v4  ;;  %v1112_v7 = vld [vmem:[%s1392_s0 + $0x8] sm:$0xff]  ;;  %v1133_v16 = vld [vmem:[%s1392_s0 + $0x18] sm:$0xff]  ;;  %s807_s30 = sshll.u32 %s1060_s29, 4  ;;  %s1062_s7 = smov 8   ;;  %s808_s30 = int_to_ptr.vmem [resolvable:$true] %s807_s30 }
   0x9   :  { %919 = vrot.lane.b32.xlu0 %v918_v2, %s1055_s17  ;;  %60 = vmatpush.msra.mxu0 %v38_v0  ;;  %v1119_v8 = vld [vmem:[%s1394_s2 + $0x20] ss:$0 sm:$0xff]  ;;  %v1142_v20 = vld [vmem:[%s1394_s2 + $0x28] ss:$0 sm:$0xff]  ;;  %v1151_v27 = vld [vmem:[%s1394_s2 + $0x29] ss:$0 sm:$0xff] }
   0xa   :  { %127 = vrot.lane.b32.xlu1 %v1119_v8, %s1055_s17  ;;  %v1160_v30 = vld [vmem:[%s1394_s2 + $0x2a] ss:$0 sm:$0xff]  ;;  %934 = vrot.lane.b32.xlu2 %v923_v6, %s1057_s14  ;;  %v1171_v33 = vld [vmem:[%s1394_s2 + $0x2b] ss:$0 sm:$0xff] }
   0xb   :  { %61 = vmatpush.msra.mxu0 %v37_v4  ;;  %v175_v36 = vld [vmem:[%s1394_s2 + $0x30] sm:$0xff]  ;;  %v176_v40 = vld [vmem:[%s1394_s2 + $0x38] sm:$0xff] }
   0xd   :  { %62 = vmatpush.msra.mxu0 %v36_v3 }
   0xe   :  { %822 = vmatmul.msk.f32.vlgmr.msra.gmra.mxu0 %vm40_vm0, %v1104_v5 }
  0x11   :  { %924 = vrot.lane.b32.xlu0 %v923_v6, %s1055_s17 }
  0x12   :  { %929 = vrot.lane.b32.xlu1 %v918_v2, %s1057_s14 }
  0x16   :  { %823 = vmatmul.msk.f32.gmra.mxu0 %vm40_vm0, %v1112_v7 }
  0x64   :  { %v935_v49 = vpop.permute.xlu2 %934 }
  0x65   :  { %v936_v52 = vunpack.i.l.bf16 %v935_v49  ;;  %v937_v55 = vunpack.i.h.bf16 %v935_v49  ;;  %v477_v49 = vsel %vm40_vm0, %v1126_v15, 0.0 }
  0x7b   :  { %v920_v9 = vpop.permute.xlu0 %919 }
  0x7c   :  { %v921_v10 = vunpack.i.l.bf16 %v920_v9  ;;  %v922_v11 = vunpack.i.h.bf16 %v920_v9  ;;  %v128_v19 = vpop.permute.xlu1 %127 }
  0x7e   :  { %148 = vmatpush.msra.mxu2 %v921_v10 }
  0x80   :  { %149 = vmatpush.msra.mxu2 %v922_v11 }
  0x83   :  { %v925_v12 = vpop.permute.xlu0 %924 }
  0x84   :  { %v926_v13 = vunpack.i.l.bf16 %v925_v12  ;;  %v927_v14 = vunpack.i.h.bf16 %v925_v12  ;;  %v930_v48 = vpop.permute.xlu1 %929 }
  0x85   :  { %v931_v50 = vunpack.i.l.bf16 %v930_v48  ;;  %v932_v51 = vunpack.i.h.bf16 %v930_v48 }
  0x86   :  { %150 = vmatpush.msra.mxu2 %v926_v13 }
  0x87   :  { %104 = vmatpush.msra.mxu1 %v931_v50 }
  0x88   :  { %151 = vmatpush.msra.mxu2 %v927_v14 }
  0x89   :  { %826 = vmatmul.msk.f32.vlgmr.msra.gmra.mxu2 %vm40_vm0, %v1126_v15  ;;  %105 = vmatpush.msra.mxu1 %v932_v51 }
  0x8b   :  { %v64_v17 = vpop.f32.mrf.mxu0  ;;  %106 = vmatpush.msra.mxu1 %v936_v52 }
  0x8d   :  { %107 = vmatpush.msra.mxu1 %v937_v55  ;;  %v421_v55 = vsel %vm40_vm0, %v1112_v7, 0.0 }
  0x8e   :  { %824 = vmatmul.msk.f32.vlgmr.msra.gmra.mxu1 %vm40_vm0, %v1104_v5 }
  0x91   :  { %827 = vmatmul.msk.f32.gmra.mxu2 %vm40_vm0, %v1133_v16 }
  0x93   :  { %v67_v18 = vpop.f32.mrf.mxu0 }
  0x94   :  { %828 = vmatpush.xpose.msk.msra.mxu3 %vm40_vm0, %v67_v18 }
  0x96   :  { %825 = vmatmul.msk.f32.gmra.mxu1 %vm40_vm0, %v1112_v7 }
  0x98   :  { %829 = vmatpush.xpose.msk.msra.mxu3 %vm40_vm0, %v64_v17 }
 0x10c   :  { %v153_v21 = vpop.f32.mrf.mxu2 }
 0x10d   :  { %v154_v22 = vadd.f32 %v153_v21, %v128_v19 }
 0x10f   :  { %v164_v23 = vmul.f32 %v1142_v20, %v154_v22  ;;  %v167_v28 = vmul.f32 %v1151_v27, %v154_v22  ;;  %v170_v31 = vmul.f32 %v1160_v30, %v154_v22  ;;  %v173_v34 = vmul.f32 %v1171_v33, %v154_v22 }
 0x111   :  { %830 = vmatmul.msk.f32.vlgmr.msra.gmra.mxu3 %vm40_vm0, %v164_v23 }
 0x114   :  { %v156_v24 = vpop.f32.mrf.mxu2 }
 0x115   :  { %v157_v25 = vadd.f32 %v156_v24, %v128_v19 }
 0x117   :  { %v165_v26 = vmul.f32 %v1142_v20, %v157_v25  ;;  %v168_v29 = vmul.f32 %v1151_v27, %v157_v25  ;;  %v171_v32 = vmul.f32 %v1160_v30, %v157_v25  ;;  %v174_v35 = vmul.f32 %v1171_v33, %v157_v25 }
 0x119   :  { %831 = vmatmul.msk.f32.gmra.mxu3 %vm40_vm0, %v165_v26 }
 0x121   :  { %832 = vmatmul.msk.f32.gmra.mxu3 %vm40_vm0, %v167_v28 }
 0x129   :  { %833 = vmatmul.msk.f32.gmra.mxu3 %vm40_vm0, %v168_v29 }
 0x131   :  { %834 = vmatmul.msk.f32.gmra.mxu3 %vm40_vm0, %v170_v31 }
 0x139   :  { %835 = vmatmul.msk.f32.gmra.mxu3 %vm40_vm0, %v171_v32 }
 0x141   :  { %836 = vmatmul.msk.f32.gmra.mxu3 %vm40_vm0, %v173_v34 }
 0x149   :  { %837 = vmatmul.msk.f32.gmra.mxu3 %vm40_vm0, %v174_v35 }
 0x194   :  { %v224_v37 = vpop.f32.mrf.mxu3 }
 0x195   :  { %v225_v38 = vadd.f32 %v224_v37, %v175_v36 }
 0x197   :  { %v249_v39 = vsel %vm248_vm1, %v225_v38, -inf }
 0x198   :  { %250 = vmax.xlane.f32.xlu2 %v249_v39 }
 0x19c   :  { %v227_v41 = vpop.f32.mrf.mxu3 }
 0x19d   :  { %v228_v42 = vadd.f32 %v227_v41, %v176_v40 }
 0x19f   :  { %v252_v43 = vsel %vm248_vm1, %v228_v42, -inf }
 0x1a0   :  { %253 = vmax.xlane.f32.xlu0 %v252_v43 }
 0x1a4   :  { %v230_v44 = vpop.f32.mrf.mxu3 }
 0x1a5   :  { %v231_v45 = vadd.f32 %v230_v44, %v175_v36 }
 0x1a7   :  { %v255_v46 = vsel %vm248_vm1, %v231_v45, -inf }
 0x1a8   :  { %256 = vmax.xlane.f32.xlu1 %v255_v46 }
 0x1ac   :  { %v233_v47 = vpop.f32.mrf.mxu3 }
 0x1ad   :  { %v234_v60 = vadd.f32 %v233_v47, %v176_v40 }
 0x1af   :  { %v258_v0 = vsel %vm248_vm1, %v234_v60, -inf }
 0x1b4   :  { %v236_v53 = vpop.f32.mrf.mxu3 }
 0x1b5   :  { %v1186_v54 = vadd.f32 %v236_v53, %v175_v36  ;;  %v418_v53 = vsel %vm40_vm0, %v1104_v5, 0.0 }
 0x1b7   :  { %v261_v56 = vsel %vm248_vm1, %v1186_v54, -inf }
 0x1b8   :  { %262 = vmax.xlane.f32.xlu1 %v261_v56  ;;  %v109_v56 = vpop.f32.mrf.mxu1 }
 0x1bc   :  { %v239_v57 = vpop.f32.mrf.mxu3 }
 0x1bd   :  { %v240_v58 = vadd.f32 %v239_v57, %v176_v40 }
 0x1bf   :  { %v264_v59 = vsel %vm248_vm1, %v240_v58, -inf }
 0x1c0   :  { %265 = vmax.xlane.f32.xlu2 %v264_v59  ;;  %v112_v57 = vpop.f32.mrf.mxu1 }
 0x1c4   :  { %v242_v61 = vpop.f32.mrf.mxu3 }
 0x1c5   :  { %v243_v62 = vadd.f32 %v242_v61, %v175_v36 }
 0x1c7   :  { %v267_v63 = vsel %vm248_vm1, %v243_v62, -inf }
 0x1c8   :  { %268 = vmax.xlane.f32.xlu0 %v267_v63  ;;  %259 = vmax.xlane.f32.xlu2 %v258_v0 }
 0x1cc   :  { %v245_v1 = vpop.f32.mrf.mxu3 }
 0x1cd   :  { %v246_v2 = vadd.f32 %v245_v1, %v176_v40 }
 0x1cf   :  { %v270_v3 = vsel %vm248_vm1, %v246_v2, -inf }
 0x1d0   :  { %271 = vmax.xlane.f32.xlu2 %v270_v3 }
 0x1d1   :  { %89 = vrot.lane.b32.xlu1 %v1119_v8, %s1057_s14 }
 0x20b   :  { %v251_v4 = vpop.xlane.xlu2 %250 }
 0x20c   :  { %v273_v6 = vsub.f32 %v225_v38, %v251_v4 }
 0x20e   :  { %v281_v9 = vmul.f32 1.442695, %v273_v6 }
 0x210   :  { %952 = vpow2.f32 %v281_v9  ;;  %v1058_v9 = vmov 32.0  }
 0x213   :  { %v254_v10 = vpop.xlane.xlu0 %253 }
 0x214   :  { %v274_v11 = vsub.f32 %v228_v42, %v254_v10 }
 0x216   :  { %v1200_v12 = vpop.eup %952  ;;  %v283_v13 = vmul.f32 1.442695, %v274_v11 }
 0x217   :  { %v297_v14 = vsel %vm248_vm1, %v1200_v12, 0.0 }
 0x218   :  { %954 = vpow2.f32 %v283_v13  ;;  %298 = vadd.xlane.f32.xlu0 %v297_v14 }
 0x21b   :  { %v257_v17 = vpop.xlane.xlu1 %256 }
 0x21c   :  { %v275_v18 = vsub.f32 %v231_v45, %v257_v17 }
 0x21e   :  { %v1204_v19 = vpop.eup %954  ;;  %v285_v21 = vmul.f32 1.442695, %v275_v18 }
 0x21f   :  { %v300_v8 = vsel %vm248_vm1, %v1204_v19, 0.0 }
 0x220   :  { %956 = vpow2.f32 %v285_v21  ;;  %301 = vadd.xlane.f32.xlu2 %v300_v8 }
 0x226   :  { %v1208_v22 = vpop.eup %956 }
 0x227   :  { %v303_v23 = vsel %vm248_vm1, %v1208_v22, 0.0 }
 0x228   :  { %304 = vadd.xlane.f32.xlu0 %v303_v23 }
 0x22b   :  { %v263_v31 = vpop.xlane.xlu1 %262 }
 0x22c   :  { %v277_v38 = vsub.f32 %v1186_v54, %v263_v31  ;;  %v480_v54 = vsel %vm40_vm0, %v1133_v16, 0.0 }
 0x22e   :  { %v289_v40 = vmul.f32 1.442695, %v277_v38 }
 0x233   :  { %v266_v24 = vpop.xlane.xlu2 %265 }
 0x234   :  { %v278_v25 = vsub.f32 %v240_v58, %v266_v24 }
 0x236   :  { %v291_v26 = vmul.f32 1.442695, %v278_v25 }
 0x238   :  { %958 = vpow2.f32 %v291_v26 }
 0x23b   :  { %v269_v28 = vpop.xlane.xlu0 %268  ;;  %v260_v29 = vpop.xlane.xlu2 %259 }
 0x23c   :  { %v279_v32 = vsub.f32 %v243_v62, %v269_v28  ;;  %v276_v34 = vsub.f32 %v234_v60, %v260_v29 }
 0x23e   :  { %v1212_v35 = vpop.eup %958  ;;  %v293_v36 = vmul.f32 1.442695, %v279_v32  ;;  %v287_v37 = vmul.f32 1.442695, %v276_v34 }
 0x23f   :  { %v312_v39 = vsel %vm248_vm1, %v1212_v35, 0.0 }
 0x240   :  { %960 = vpow2.f32 %v293_v36  ;;  %313 = vadd.xlane.f32.xlu2 %v312_v39 }
 0x241   :  { %962 = vpow2.f32 %v287_v37 }
 0x242   :  { %964 = vpow2.f32 %v289_v40 }
 0x243   :  { %v272_v41 = vpop.xlane.xlu2 %271  ;;  %v90_v58 = vpop.permute.xlu1 %89 }
 0x244   :  { %v280_v42 = vsub.f32 %v246_v2, %v272_v41  ;;  %v113_v59 = vadd.f32 %v112_v57, %v90_v58  ;;  %v110_v60 = vadd.f32 %v109_v56, %v90_v58 }
 0x246   :  { %v1217_v43 = vpop.eup %960  ;;  %v295_v44 = vmul.f32 1.442695, %v280_v42  ;;  %375 = vmatpush.msrb.mxu0 %v113_v59  ;;  %907 = vmatpush.msrb.mxu1 %v113_v59 }
 0x247   :  { %v1219_v45 = vpop.eup %962  ;;  %v315_v46 = vsel %vm248_vm1, %v1217_v43, 0.0 }
 0x248   :  { %966 = vpow2.f32 %v295_v44  ;;  %316 = vadd.xlane.f32.xlu2 %v315_v46  ;;  %v306_v47 = vsel %vm248_vm1, %v1219_v45, 0.0  ;;  %v1225_v48 = vpop.eup %964  ;;  %376 = vmatpush.msrb.mxu0 %v110_v60 }
 0x249   :  { %307 = vadd.xlane.f32.xlu0 %v306_v47  ;;  %v309_v52 = vsel %vm248_vm1, %v1225_v48, 0.0  ;;  %908 = vmatpush.msrb.mxu1 %v110_v60 }
 0x24e   :  { %v1229_v50 = vpop.eup %966 }
 0x24f   :  { %v318_v51 = vsel %vm248_vm1, %v1229_v50, 0.0 }
 0x250   :  { %478 = vadd.xlane.f32.xlu2 %v477_v49  ;;  %319 = vadd.xlane.f32.xlu1 %v318_v51 }
 0x251   :  { %310 = vadd.xlane.f32.xlu0 %v309_v52 }
 0x258   :  { %419 = vadd.xlane.f32.xlu2 %v418_v53  ;;  %v1290_v53 = vld [vmem:[%s1394_s2 + $0x23] ss:$0 sm:$0xff] }
 0x259   :  { %481 = vadd.xlane.f32.xlu0 %v480_v54  ;;  %v1297_v54 = vld [vmem:[%s1394_s2 + $0x24] ss:$0 sm:$0xff] }
 0x261   :  { %422 = vadd.xlane.f32.xlu0 %v421_v55 }
 0x28b   :  { %v299_v61 = vpop.xlane.xlu0 %298 }
 0x28c   :  { %968 = vrcp.f32 %v299_v61 }
 0x292   :  { %v969_v62 = vpop.eup %968 }
 0x293   :  { %v302_v63 = vpop.xlane.xlu2 %301  ;;  %v329_v0 = vmul.f32 %v969_v62, %v1200_v12 }
 0x294   :  { %970 = vrcp.f32 %v302_v63 }
 0x295   :  { %838 = vmatmul.msk.f32.vlgmr.msrb.gmra.mxu0 %vm248_vm1, %v329_v0 }
 0x29a   :  { %v971_v1 = vpop.eup %970 }
 0x29b   :  { %v305_v2 = vpop.xlane.xlu0 %304  ;;  %v330_v3 = vmul.f32 %v971_v1, %v1204_v19 }
 0x29c   :  { %972 = vrcp.f32 %v305_v2 }
 0x29d   :  { %839 = vmatmul.msk.f32.gmra.mxu0 %vm248_vm1, %v330_v3  ;;  %974 = vrcp.f32 %v1058_v9 }
 0x2a2   :  { %v973_v4 = vpop.eup %972 }
 0x2a3   :  { %v331_v6 = vmul.f32 %v973_v4, %v1208_v22  ;;  %v975_v10 = vpop.eup %974 }
 0x2a4   :  { %v425_v11 = vmul.f32 32.0, %v975_v10  ;;  %vm429_vm2 = vweird.f32 %v975_v10 }
 0x2a5   :  { %840 = vmatmul.msk.f32.gmra.mxu0 %vm248_vm1, %v331_v6 }
 0x2a6   :  { %v426_v13 = vsub.f32 1.0, %v425_v11 }
 0x2a8   :  { %v427_v14 = vmul.f32 %v975_v10, %v426_v13 }
 0x2aa   :  { %v428_v8 = vadd.f32 %v975_v10, %v427_v14 }
 0x2ac   :  { %v1249_v22 = vsel %vm429_vm2, %v975_v10, %v428_v8 }
 0x2b3   :  { %v314_v12 = vpop.xlane.xlu2 %313 }
 0x2b4   :  { %976 = vrcp.f32 %v314_v12 }
 0x2ba   :  { %v977_v17 = vpop.eup %976 }
 0x2bb   :  { %v317_v18 = vpop.xlane.xlu2 %316  ;;  %v334_v19 = vmul.f32 %v977_v17, %v1212_v35 }
 0x2bc   :  { %v308_v21 = vpop.xlane.xlu0 %307  ;;  %978 = vrcp.f32 %v317_v18 }
 0x2bd   :  { %980 = vrcp.f32 %v308_v21  ;;  %843 = vmatmul.msk.f32.vlgmr.msrb.gmra.mxu1 %vm248_vm1, %v334_v19 }
 0x2c2   :  { %v979_v23 = vpop.eup %978 }
 0x2c3   :  { %v981_v24 = vpop.eup %980  ;;  %v320_v25 = vpop.xlane.xlu1 %319  ;;  %v335_v28 = vmul.f32 %v979_v23, %v1217_v43 }
 0x2c4   :  { %v479_v26 = vpop.xlane.xlu2 %478  ;;  %v311_v29 = vpop.xlane.xlu0 %310  ;;  %982 = vrcp.f32 %v320_v25  ;;  %v332_v32 = vmul.f32 %v981_v24, %v1219_v45 }
 0x2c5   :  { %v483_v31 = vmul.f32 %v479_v26, %v1249_v22  ;;  %984 = vrcp.f32 %v311_v29  ;;  %844 = vmatmul.msk.f32.gmra.mxu1 %vm248_vm1, %v335_v28 }
 0x2c6   :  { %841 = vmatmul.msk.f32.gmra.mxu0 %vm248_vm1, %v332_v32 }
 0x2c7   :  { %v1256_v34 = vsub.f32 %v1126_v15, %v483_v31 }
 0x2c9   :  { %v487_v35 = vmul.f32 %v1256_v34, %v1256_v34 }
 0x2ca   :  { %v983_v36 = vpop.eup %982 }
 0x2cb   :  { %v489_v37 = vsel %vm40_vm0, %v487_v35, 0.0  ;;  %v985_v38 = vpop.eup %984  ;;  %v336_v40 = vmul.f32 %v983_v36, %v1229_v50 }
 0x2cc   :  { %490 = vadd.xlane.f32.xlu2 %v489_v37  ;;  %v420_v39 = vpop.xlane.xlu2 %419  ;;  %v482_v41 = vpop.xlane.xlu0 %481  ;;  %v333_v43 = vmul.f32 %v985_v38, %v1225_v48 }
 0x2cd   :  { %v431_v42 = vmul.f32 %v1249_v22, %v420_v39  ;;  %v484_v15 = vmul.f32 %v482_v41, %v1249_v22  ;;  %845 = vmatmul.msk.f32.gmra.mxu1 %vm248_vm1, %v336_v40 }
 0x2ce   :  { %842 = vmatmul.msk.f32.gmra.mxu0 %vm248_vm1, %v333_v43 }
 0x2cf   :  { %v1268_v44 = vsub.f32 %v1104_v5, %v431_v42  ;;  %v1272_v45 = vsub.f32 %v1133_v16, %v484_v15 }
 0x2d1   :  { %v435_v46 = vmul.f32 %v1268_v44, %v1268_v44  ;;  %v488_v47 = vmul.f32 %v1272_v45, %v1272_v45 }
 0x2d3   :  { %v437_v48 = vsel %vm40_vm0, %v435_v46, 0.0  ;;  %v492_v49 = vsel %vm40_vm0, %v488_v47, 0.0 }
 0x2d4   :  { %438 = vadd.xlane.f32.xlu1 %v437_v48  ;;  %493 = vadd.xlane.f32.xlu0 %v492_v49  ;;  %v423_v50 = vpop.xlane.xlu0 %422 }
 0x2d5   :  { %v432_v5 = vmul.f32 %v1249_v22, %v423_v50 }
 0x2d7   :  { %v1282_v51 = vsub.f32 %v1112_v7, %v432_v5 }
 0x2d9   :  { %v436_v16 = vmul.f32 %v1282_v51, %v1282_v51 }
 0x2db   :  { %v440_v52 = vsel %vm40_vm0, %v436_v16, 0.0 }
 0x2dc   :  { %441 = vadd.xlane.f32.xlu1 %v440_v52 }
 0x2e4   :  { %522 = vrot.lane.b32.xlu2 %v1290_v53, %s1055_s17 }
 0x2e8   :  { %528 = vrot.lane.b32.xlu0 %v1297_v54, %s1055_s17  ;;  %s1059_s17 = smov 32  }
 0x312   :  { %v378_v7 = vpop.f32.mrf.mxu0 }
 0x313   :  { %v402_v25 = vmul.f32 %v1142_v20, %v378_v7 }
 0x31a   :  { %v381_v55 = vpop.f32.mrf.mxu0 }
 0x31b   :  { %v403_v48 = vmul.f32 %v1142_v20, %v381_v55 }
 0x322   :  { %v384_v56 = vpop.f32.mrf.mxu0 }
 0x323   :  { %v404_v18 = vmul.f32 %v1151_v27, %v384_v56 }
 0x325   :  { %v406_v35 = vadd.f32 %v404_v18, %v402_v25 }
 0x33a   :  { %v1302_v62 = vpop.f32.mrf.mxu1 }
 0x33f   :  { %v491_v57 = vpop.xlane.xlu2 %490 }
 0x340   :  { %v495_v58 = vmul.f32 %v491_v57, %v1249_v22 }
 0x342   :  { %v497_v59 = vadd.f32 1e-05, %v495_v58  ;;  %v396_v19 = vpop.f32.mrf.mxu1 }
 0x343   :  { %v387_v60 = vpop.f32.mrf.mxu0  ;;  %v412_v15 = vmul.f32 %v1171_v33, %v396_v19 }
 0x344   :  { %986 = vrsqrt.f32 %v497_v59  ;;  %vm505_vm4 = vweird.f32 %v497_v59  ;;  %v405_v42 = vmul.f32 %v1151_v27, %v387_v60 }
 0x346   :  { %v407_v56 = vadd.f32 %v405_v42, %v403_v48 }
 0x347   :  { %v439_v61 = vpop.xlane.xlu1 %438  ;;  %v494_v63 = vpop.xlane.xlu0 %493 }
 0x348   :  { %v443_v0 = vmul.f32 %v439_v61, %v1249_v22  ;;  %v496_v1 = vmul.f32 %v494_v63, %v1249_v22  ;;  %v523_v32 = vpop.permute.xlu2 %522  ;;  %v409_v61 = vmul.f32 %v1160_v30, %v1302_v62 }
 0x34a   :  { %v987_v2 = vpop.eup %986  ;;  %v445_v3 = vadd.f32 1e-05, %v443_v0  ;;  %v498_v6 = vadd.f32 1e-05, %v496_v1  ;;  %v399_v5 = vpop.f32.mrf.mxu1 }
 0x34b   :  { %v500_v4 = vmul.f32 %v987_v2, %v497_v59  ;;  %vm506_vm3 = vweird.f32 %v987_v2  ;;  %v390_v13 = vpop.f32.mrf.mxu0  ;;  %v413_v20 = vmul.f32 %v1171_v33, %v399_v5  ;;  %v898_v5 = vld [vmem:[#allocation2 + $0x18] sm:$0xff] }
 0x34c   :  { %988 = vrsqrt.f32 %v445_v3  ;;  %vm507_vm5 = vmor %vm505_vm4, %vm506_vm3  ;;  %v408_v28 = vmul.f32 %v1160_v30, %v390_v13  ;;  %vm453_vm6 = vweird.f32 %v445_v3  ;;  %vm515_vm10 = vweird.f32 %v498_v6  ;;  %713 = vmatpush.bf16.msra.mxu1 %v898_v5 }
 0x34d   :  { %v501_v9 = vmul.f32 %v987_v2, %v500_v4  ;;  %990 = vrsqrt.f32 %v498_v6 }
 0x34e   :  { %v410_v40 = vadd.f32 %v408_v28, %v406_v35 }
 0x34f   :  { %v502_v10 = vmul.f32 0.5, %v501_v9  ;;  %v442_v11 = vpop.xlane.xlu1 %441 }
 0x350   :  { %v444_v14 = vmul.f32 %v442_v11, %v1249_v22  ;;  %v414_v50 = vadd.f32 %v412_v15, %v410_v40 }
 0x351   :  { %v503_v12 = vsub.f32 1.5, %v502_v10 }
 0x352   :  { %v989_v17 = vpop.eup %988  ;;  %v446_v23 = vadd.f32 1e-05, %v444_v14 }
 0x353   :  { %v991_v21 = vpop.eup %990  ;;  %v448_v8 = vmul.f32 %v989_v17, %v445_v3  ;;  %v504_v24 = vmul.f32 %v987_v2, %v503_v12  ;;  %vm454_vm7 = vweird.f32 %v989_v17 }
 0x354   :  { %v510_v26 = vmul.f32 %v991_v21, %v498_v6  ;;  %992 = vrsqrt.f32 %v446_v23  ;;  %vm516_vm8 = vweird.f32 %v991_v21  ;;  %vm455_vm9 = vmor %vm453_vm6, %vm454_vm7  ;;  %vm463_vm12 = vweird.f32 %v446_v23 }
 0x355   :  { %v449_v29 = vmul.f32 %v989_v17, %v448_v8  ;;  %v508_v31 = vsel %vm507_vm5, %v987_v2, %v504_v24  ;;  %vm517_vm11 = vmor %vm515_vm10, %vm516_vm8  ;;  %v411_v2 = vadd.f32 %v409_v61, %v407_v56 }
 0x356   :  { %v511_v36 = vmul.f32 %v991_v21, %v510_v26  ;;  %v519_v37 = vmul.f32 %v508_v31, %v1256_v34 }
 0x357   :  { %v450_v38 = vmul.f32 0.5, %v449_v29  ;;  %v415_v6 = vadd.f32 %v413_v20, %v411_v2 }
 0x358   :  { %v512_v39 = vmul.f32 0.5, %v511_v36  ;;  %v525_v41 = vmul.f32 %v523_v32, %v519_v37 }
 0x359   :  { %v451_v43 = vsub.f32 1.5, %v450_v38 }
 0x35a   :  { %v513_v46 = vsub.f32 1.5, %v512_v39  ;;  %v993_v47 = vpop.eup %992  ;;  %v529_v34 = vpop.permute.xlu0 %528 }
 0x35b   :  { %v452_v49 = vmul.f32 %v989_v17, %v451_v43  ;;  %v458_v16 = vmul.f32 %v993_v47, %v446_v23  ;;  %v531_v7 = vadd.f32 %v529_v34, %v525_v41  ;;  %vm464_vm13 = vweird.f32 %v993_v47 }
 0x35c   :  { %v514_v52 = vmul.f32 %v991_v21, %v513_v46  ;;  %vm465_vm14 = vmor %vm463_vm12, %vm464_vm13  ;;  %vm705_vm12 = vcmask 523264  }
 0x35d   :  { %v456_v27 = vsel %vm455_vm9, %v989_v17, %v452_v49  ;;  %v459_v58 = vmul.f32 %v993_v47, %v458_v16  ;;  %v533_v60 = vadd.f32 %v531_v7, %v414_v50 }
 0x35e   :  { %v467_v57 = vmul.f32 %v456_v27, %v1268_v44  ;;  %v518_v59 = vsel %vm517_vm11, %v991_v21, %v514_v52  ;;  %v897_v52 = vld [vmem:[#allocation2 + $0x10] sm:$0xff]  ;;  %v896_v27 = vld [vmem:[#allocation2 + $0x8] sm:$0xff] }
 0x35f   :  { %v520_v55 = vmul.f32 %v518_v59, %v1272_v45  ;;  %v460_v63 = vmul.f32 0.5, %v459_v58  ;;  %v589_v0 = vsel %vm40_vm0, %v533_v60, 0.0  ;;  %714 = vmatpush.bf16.msra.mxu1 %v897_v52  ;;  %v900_v52 = vld [vmem:[#allocation2 + $0x28] sm:$0xff] }
 0x360   :  { %v470_v1 = vmul.f32 %v1290_v53, %v467_v57  ;;  %590 = vadd.xlane.f32.xlu0 %v589_v0 }
 0x361   :  { %v526_v3 = vmul.f32 %v523_v32, %v520_v55  ;;  %v461_v44 = vsub.f32 1.5, %v460_v63 }
 0x362   :  { %v473_v4 = vadd.f32 %v1297_v54, %v470_v1 }
 0x363   :  { %v532_v30 = vadd.f32 %v529_v34, %v526_v3  ;;  %v462_v62 = vmul.f32 %v993_v47, %v461_v44  ;;  %715 = vmatpush.bf16.msra.mxu1 %v896_v27 }
 0x364   :  { %v1322_v33 = vadd.f32 %v473_v4, %v414_v50 }
 0x365   :  { %v1324_v9 = vadd.f32 %v532_v30, %v415_v6  ;;  %v466_v45 = vsel %vm465_vm14, %v993_v47, %v462_v62 }
 0x366   :  { %v535_v10 = vsel %vm40_vm0, %v1322_v33, 0.0  ;;  %v468_v11 = vmul.f32 %v466_v45, %v1282_v51 }
 0x367   :  { %536 = vadd.xlane.f32.xlu1 %v535_v10  ;;  %v592_v12 = vsel %vm40_vm0, %v1324_v9, 0.0 }
 0x368   :  { %593 = vadd.xlane.f32.xlu2 %v592_v12  ;;  %v471_v13 = vmul.f32 %v1290_v53, %v468_v11 }
 0x36a   :  { %v474_v14 = vadd.f32 %v1297_v54, %v471_v13 }
 0x36c   :  { %v1333_v17 = vadd.f32 %v474_v14, %v415_v6 }
 0x36e   :  { %v538_v18 = vsel %vm40_vm0, %v1333_v17, 0.0 }
 0x36f   :  { %539 = vadd.xlane.f32.xlu1 %v538_v18 }
 0x374   :  { %638 = vrot.lane.b32.xlu0 %v1297_v54, %s1059_s17 }
 0x37c   :  { %584 = vrot.lane.b32.xlu0 %v1297_v54, %s1057_s14 }
 0x384   :  { %791 = vrot.lane.b32.xlu0 %v533_v60, %s1059_s17 }
 0x3d3   :  { %v591_v51 = vpop.xlane.xlu0 %590 }
 0x3d4   :  { %v595_v19 = vmul.f32 %v591_v51, %v1249_v22 }
 0x3d6   :  { %v597_v21 = vsub.f32 %v533_v60, %v595_v19  ;;  %v895_v60 = vld [vmem:[#allocation2] sm:$0xff] }
 0x3d7   :  { %716 = vmatpush.bf16.msra.mxu1 %v895_v60 }
 0x3d8   :  { %v599_v8 = vmul.f32 %v597_v21, %v597_v21 }
 0x3da   :  { %v537_v23 = vpop.xlane.xlu1 %536  ;;  %v601_v26 = vsel %vm40_vm0, %v599_v8, 0.0 }
 0x3db   :  { %v541_v24 = vmul.f32 %v537_v23, %v1249_v22  ;;  %v594_v25 = vpop.xlane.xlu2 %593  ;;  %602 = vadd.xlane.f32.xlu1 %v601_v26 }
 0x3dc   :  { %v596_v28 = vmul.f32 %v594_v25, %v1249_v22 }
 0x3dd   :  { %v1347_v29 = vsub.f32 %v1322_v33, %v541_v24  ;;  %v906_v24 = vld [vmem:[#allocation2 + $0x58] sm:$0xff] }
 0x3de   :  { %v598_v54 = vsub.f32 %v1324_v9, %v596_v28  ;;  %775 = vmatpush.bf16.msrb.mxu2 %v906_v24 }
 0x3df   :  { %v545_v31 = vmul.f32 %v1347_v29, %v1347_v29 }
 0x3e0   :  { %v600_v32 = vmul.f32 %v598_v54, %v598_v54 }
 0x3e1   :  { %v547_v35 = vsel %vm40_vm0, %v545_v31, 0.0  ;;  %v904_v31 = vld [vmem:[#allocation2 + $0x48] sm:$0xff] }
 0x3e2   :  { %548 = vadd.xlane.f32.xlu2 %v547_v35  ;;  %v604_v36 = vsel %vm40_vm0, %v600_v32, 0.0  ;;  %v540_v37 = vpop.xlane.xlu1 %539  ;;  %v903_v35 = vld [vmem:[#allocation2 + $0x40] sm:$0xff] }
 0x3e3   :  { %v542_v38 = vmul.f32 %v540_v37, %v1249_v22  ;;  %605 = vadd.xlane.f32.xlu1 %v604_v36 }
 0x3e5   :  { %v1356_v39 = vsub.f32 %v1333_v17, %v542_v38 }
 0x3e6   :  { %v639_v4 = vpop.permute.xlu0 %638 }
 0x3e7   :  { %v546_v40 = vmul.f32 %v1356_v39, %v1356_v39 }
 0x3e9   :  { %v550_v41 = vsel %vm40_vm0, %v546_v40, 0.0 }
 0x3ea   :  { %551 = vadd.xlane.f32.xlu2 %v550_v41 }
 0x3fc   :  { %633 = vrot.lane.b32.xlu1 %v1290_v53, %s1059_s17 }
 0x402   :  { %579 = vrot.lane.b32.xlu2 %v1290_v53, %s1057_s14 }
 0x44e   :  { %v603_v42 = vpop.xlane.xlu1 %602 }
 0x44f   :  { %v607_v43 = vmul.f32 %v603_v42, %v1249_v22 }
 0x451   :  { %v609_v15 = vadd.f32 1e-05, %v607_v43 }
 0x453   :  { %994 = vrsqrt.f32 %v609_v15  ;;  %vm617_vm1 = vweird.f32 %v609_v15 }
 0x455   :  { %v549_v45 = vpop.xlane.xlu2 %548 }
 0x456   :  { %v606_v46 = vpop.xlane.xlu1 %605  ;;  %v553_v11 = vmul.f32 %v549_v45, %v1249_v22 }
 0x457   :  { %v608_v47 = vmul.f32 %v606_v46, %v1249_v22 }
 0x458   :  { %v555_v13 = vadd.f32 1e-05, %v553_v11 }
 0x459   :  { %v995_v48 = vpop.eup %994  ;;  %v610_v49 = vadd.f32 1e-05, %v608_v47 }
 0x45a   :  { %v612_v34 = vmul.f32 %v995_v48, %v609_v15  ;;  %vm618_vm15 = vweird.f32 %v995_v48  ;;  %vm563_vm8 = vweird.f32 %v555_v13  ;;  %v585_v15 = vpop.permute.xlu0 %584 }
 0x45b   :  { %996 = vrsqrt.f32 %v610_v49  ;;  %vm619_vm3 = vmor %vm617_vm1, %vm618_vm15  ;;  %vm627_vm4 = vweird.f32 %v610_v49 }
 0x45c   :  { %v613_v50 = vmul.f32 %v995_v48, %v612_v34  ;;  %998 = vrsqrt.f32 %v555_v13 }
 0x45d   :  { %v552_v10 = vpop.xlane.xlu2 %551 }
 0x45e   :  { %v614_v16 = vmul.f32 0.5, %v613_v50  ;;  %v554_v12 = vmul.f32 %v552_v10, %v1249_v22 }
 0x460   :  { %v615_v56 = vsub.f32 1.5, %v614_v16  ;;  %v556_v14 = vadd.f32 1e-05, %v554_v12 }
 0x461   :  { %v997_v7 = vpop.eup %996 }
 0x462   :  { %v622_v53 = vmul.f32 %v997_v7, %v610_v49  ;;  %v616_v59 = vmul.f32 %v995_v48, %v615_v56  ;;  %vm628_vm2 = vweird.f32 %v997_v7  ;;  %1000 = vrsqrt.f32 %v556_v14  ;;  %v999_v18 = vpop.eup %998 }
 0x463   :  { %vm629_vm5 = vmor %vm627_vm4, %vm628_vm2  ;;  %v558_v19 = vmul.f32 %v999_v18, %v555_v13  ;;  %vm564_vm6 = vweird.f32 %v999_v18  ;;  %vm573_vm9 = vweird.f32 %v556_v14 }
 0x464   :  { %v623_v57 = vmul.f32 %v997_v7, %v622_v53  ;;  %v620_v20 = vsel %vm619_vm3, %v995_v48, %v616_v59  ;;  %vm565_vm10 = vmor %vm563_vm8, %vm564_vm6  ;;  %v950_v53 = vld [vmem:[%s1394_s2 + $0x21] ss:$0 sm:$0xff] }
 0x465   :  { %v631_v0 = vmul.f32 %v620_v20, %v597_v21  ;;  %v559_v8 = vmul.f32 %v999_v18, %v558_v19  ;;  %v580_v41 = vpop.permute.xlu2 %579  ;;  %v951_v20 = vld [vmem:[%s1394_s2 + $0x22] ss:$0 sm:$0xff]  ;;  %s1061_s2 = smov 128  }
 0x466   :  { %v624_v58 = vmul.f32 0.5, %v623_v57 }
 0x467   :  { %v560_v25 = vmul.f32 0.5, %v559_v8 }
 0x468   :  { %v625_v61 = vsub.f32 1.5, %v624_v58  ;;  %v1001_v51 = vpop.eup %1000 }
 0x469   :  { %v568_v21 = vmul.f32 %v1001_v51, %v556_v14  ;;  %v561_v28 = vsub.f32 1.5, %v560_v25  ;;  %vm574_vm7 = vweird.f32 %v1001_v51 }
 0x46a   :  { %v626_v55 = vmul.f32 %v997_v7, %v625_v61  ;;  %vm575_vm11 = vmor %vm573_vm9, %vm574_vm7 }
 0x46b   :  { %v569_v23 = vmul.f32 %v1001_v51, %v568_v21  ;;  %v562_v22 = vmul.f32 %v999_v18, %v561_v28 }
 0x46c   :  { %v630_v63 = vsel %vm629_vm5, %v997_v7, %v626_v55  ;;  %v899_v7 = vld [vmem:[#allocation2 + $0x20] sm:$0xff]  ;;  %v792_v55 = vpop.permute.xlu0 %791 }
 0x46d   :  { %v632_v1 = vmul.f32 %v630_v63, %v598_v54  ;;  %v570_v26 = vmul.f32 0.5, %v569_v23  ;;  %v566_v36 = vsel %vm565_vm10, %v999_v18, %v562_v22 }
 0x46e   :  { %v634_v2 = vpop.permute.xlu1 %633  ;;  %v577_v38 = vmul.f32 %v566_v36, %v1347_v29  ;;  %v902_v29 = vld [vmem:[#allocation2 + $0x38] sm:$0xff] }
 0x46f   :  { %v636_v3 = vmul.f32 %v634_v2, %v631_v0  ;;  %v637_v44 = vmul.f32 %v634_v2, %v632_v1  ;;  %v571_v54 = vsub.f32 1.5, %v570_v26  ;;  %v797_v1 = vsel %vm40_vm0, %v1322_v33, %v792_v55 }
 0x470   :  { %v582_v42 = vmul.f32 %v580_v41, %v577_v38 }
 0x471   :  { %v641_v6 = vadd.f32 %v639_v4, %v636_v3  ;;  %v642_v30 = vadd.f32 %v639_v4, %v637_v44  ;;  %v572_v32 = vmul.f32 %v1001_v51, %v571_v54 }
 0x472   :  { %v587_v47 = vadd.f32 %v585_v15, %v582_v42 }
 0x473   :  { %v938_v62 = vpack.i.bf16 %v642_v30, %v641_v6  ;;  %v576_v37 = vsel %vm575_vm11, %v1001_v51, %v572_v32 }
 0x474   :  { %v578_v40 = vmul.f32 %v576_v37, %v1356_v39  ;;  %v901_v39 = vld [vmem:[#allocation2 + $0x30] sm:$0xff] }
 0x475   :  { %939 = vrot.lane.b32.xlu1 %v938_v62, %s1059_s17 }
 0x476   :  { %v583_v43 = vmul.f32 %v580_v41, %v578_v40 }
 0x478   :  { %v588_v48 = vadd.f32 %v585_v15, %v583_v43 }
 0x47d   :  { %793 = vrot.lane.b32.xlu1 %v1324_v9, %s1059_s17  ;;  %v905_v9 = vld [vmem:[#allocation2 + $0x50] sm:$0xff] }
 0x47e   :  { %776 = vmatpush.bf16.msrb.mxu2 %v905_v9 }
 0x482   :  { %777 = vmatpush.bf16.msrb.mxu2 %v904_v31 }
 0x486   :  { %778 = vmatpush.bf16.msrb.mxu2 %v903_v35 }
 0x48a   :  { %779 = vmatpush.bf16.msrb.mxu2 %v902_v29 }
 0x48e   :  { %780 = vmatpush.bf16.msrb.mxu2 %v901_v39 }
 0x492   :  { %781 = vmatpush.bf16.msrb.mxu2 %v900_v52 }
 0x496   :  { %782 = vmatpush.bf16.msrb.mxu2 %v899_v7 }
 0x4e7   :  { %v940_v46 = vpop.permute.xlu1 %939 }
 0x4e8   :  { %v942_v49 = vunpack.i.h.bf16 %v940_v46  ;;  %v941_v34 = vunpack.i.l.bf16 %v940_v46 }
 0x4ea   :  { %v651_v50 = vsel %vm40_vm0, %v587_v47, %v941_v34  ;;  %v652_v5 = vsel %vm40_vm0, %v588_v48, %v942_v49 }
 0x4eb   :  { %v679_v16 = vpack.c.bf16 %v652_v5, %v651_v50 }
 0x4ed   :  { %862 = vmatmul.msk.bf16.vlgmr.msra.gmra.mxu1 %vm705_vm12, %v679_v16 }
 0x4ef   :  { %v794_v3 = vpop.permute.xlu1 %793 }
 0x4f0   :  { %v798_v6 = vsel %vm40_vm0, %v1333_v17, %v794_v3 }
 0x56a   :  { %v718_v56 = vpop.f32.mrf.mxu1 }
 0x56b   :  { %v719_v27 = vadd.f32 %v950_v53, %v718_v56 }
 0x56d   :  { %v723_v59 = vmax.f32 %v719_v27, 0.0 }
 0x572   :  { %v720_v57 = vpop.f32.mrf.mxu1 }
 0x573   :  { %v721_v58 = vadd.f32 %v950_v53, %v720_v57 }
 0x575   :  { %v724_v60 = vmax.f32 %v721_v58, 0.0 }
 0x577   :  { %v725_v61 = vpack.c.bf16 %v724_v60, %v723_v59 }
 0x579   :  { %783 = vmatmul.bf16.vlgmr.msrb.gmra.mxu2 %v725_v61 }
 0x5fc   :  { %v784_v63 = vpop.f32.mrf.mxu2 }
 0x5fd   :  { %v785_v0 = vadd.f32 %v951_v20, %v784_v63 }
 0x5ff   :  { %v799_v2 = vadd.f32 %v797_v1, %v785_v0 }
 0x601   :  { %801 = vst.msk [vmem:[#allocation5] sm:$0xff] %vm705_vm12, %v799_v2 }
 0x604   :  { %v786_v44 = vpop.f32.mrf.mxu2 }
 0x605   :  { %v787_v4 = vadd.f32 %v951_v20, %v786_v44 }
 0x607   :  { %v800_v30 = vadd.f32 %v798_v6, %v787_v4 }
 0x609   :  { %802 = vst.msk [vmem:[#allocation5 + $0x8] sm:$0xff] %vm705_vm12, %v800_v30 }
 0x60a   :  { %815 = dma.vmem_to_hbm [thread:$0]  %s808_s30, 256, %s810_s6, [#allocation4], %s1061_s2, %s1061_s2, %s1062_s7  }
 0x60b   :  { %1052 = dma.done.wait [#allocation4], 256  }
 0x60c   :  { %1053 = vsyncadd [#allocation4], 4294967040 }
 0x60d   :  { %820 = vsyncpa [#allocation3], 1 }
 0x60e   :  { %821 = vsyncpa [#allocation4], 1 }

</bundles_post_ra>
